<compile_context>
chip_gen: v7x
topology: tpu7x:2x2x1
jax: 0.10.0
libtpu: 0.0.40
codegen_flags: <defaults>
</compile_context>

<pallas_src>
import functools

import jax
import jax.numpy as jnp
from jax import lax
from jax.experimental import pallas as pl
from jax.experimental.pallas import tpu as pltpu


def _outconv_kernel(x_ref, w_ref, b_ref, o_ref, col_ref, *, H, W, cin, cin_pad, nb):
    """3x3 same-padding conv for `nb` batch elements (NCHW, spatial flattened).

    x_ref:   (nb, cin, H*W)        input block (W fastest -> 128-lane axis)
    w_ref:   (Cout, 9*cin_pad)     weights, columns ordered (kh, kw, cin_pad)
    b_ref:   (Cout, 1)             bias
    o_ref:   (nb, Cout, H*W)       output block (lane-dense stores)
    col_ref: (nb, 9*cin_pad, H*W)  im2col scratch, tap rows 8-sublane aligned
    """
    HW = H * W

    # ---- hoisted, de-duplicated boundary masks -----------------------------
    # Within-image flat position of every output pixel (same for all batches).
    pos = lax.broadcasted_iota(jnp.int32, (cin, HW), 1)
    if (W & (W - 1)) == 0:
        col_j = pos & (W - 1)          # power-of-two W: no integer mod
    else:
        col_j = pos % W                # computed once, reused by all taps
    row_ok = {-1: pos >= W, 0: None, 1: pos < (HW - W)}
    col_ok = {-1: col_j >= 1, 0: None, 1: col_j < (W - 1)}

    w = w_ref[...]
    bias = b_ref[...].astype(jnp.float32)

    # Padding rows of the scratch are never overwritten -> zero them so stale
    # VMEM (possibly NaN) cannot leak through the (zero-weighted) pad columns.
    if cin_pad != cin:
        col_ref[...] = jnp.zeros_like(col_ref)

    for b in range(nb):                       # static unrolled batch fold
        x_b = x_ref[b]                        # (cin, HW)
        # Build im2col in-register: lane rotations (XLU, ~free) + at most one
        # AND and one select per tap; center tap is stored unmasked.
        for kh in range(3):
            for kw in range(3):
                dh, dw = kh - 1, kw - 1
                shift = (-(dh * W + dw)) % HW          # static rotation amount
                tap = pltpu.roll(x_b, shift=shift, axis=1) if shift else x_b
                rm, cm = row_ok[dh], col_ok[dw]
                mask = rm if cm is None else (cm if rm is None else rm & cm)
                if mask is not None:
                    tap = jnp.where(mask, tap, 0)
                t = kh * 3 + kw
                # 8-sublane-aligned row group -> no cross-tile relayout copies.
                col_ref[b, t * cin_pad:t * cin_pad + cin, :] = tap.astype(col_ref.dtype)

        # One fused MXU contraction per folded batch element, f32 accumulation,
        # lane-dense output store (HW is a multiple of 128).
        acc = jnp.dot(w, col_ref[b], preferred_element_type=jnp.float32)
        o_ref[b] = (acc + bias).astype(o_ref.dtype)


def outconv_forward(x_nchw, weight, bias, *, compute_dtype=None):
    """x: (N, Cin, H, W); weight: (Cout, Cin, 3, 3); bias: (Cout,).

    Returns (N, Cout, H, W), matching nn.Conv2d(in_ch, out_ch, 3, padding=1).
    `compute_dtype=jnp.bfloat16` optionally runs the MXU operands in bf16
    (f32 accumulation kept); default is full f32.
    """
    N, Cin, H, W = x_nchw.shape
    Cout = weight.shape[0]
    HW = H * W
    Cin_pad = 8 * pl.cdiv(Cin, 8)             # 8-sublane aligned tap rows

    in_dtype = jnp.dtype(x_nchw.dtype)
    col_dtype = jnp.dtype(compute_dtype) if compute_dtype is not None else in_dtype

    # ---- batch folding: few fat grid steps instead of N tiny ones ----------
    # Keep >= 2 parallel steps when N >= 2 so both v7x TensorCores get work;
    # fold everything else into each step, capped by a per-step VMEM budget.
    target_steps = 2 if N >= 2 else 1
    nb = pl.cdiv(N, target_steps)

    def _step_vmem_bytes(nb_):
        x_blk = 2 * nb_ * Cin * HW * in_dtype.itemsize        # double-buffered in
        o_blk = 2 * nb_ * Cout * HW * in_dtype.itemsize       # double-buffered out
        col = nb_ * 9 * Cin_pad * HW * col_dtype.itemsize     # im2col scratch
        return x_blk + o_blk + col

    VMEM_BUDGET = 16 * 1024 * 1024
    while nb > 1 and _step_vmem_bytes(nb) > VMEM_BUDGET:
        nb -= 1
    grid_n = pl.cdiv(N, nb)
    n_pad = grid_n * nb

    # NOTE (scaling): for very large H*W the 9x im2col scratch should be replaced
    # by halo-tiled HW blocks or 9-tap accumulation; irrelevant at these sizes.

    # Contiguous reshapes only for x/out (NCHW kept natively, no transposes).
    x_flat = x_nchw.reshape(N, Cin, HW)
    if n_pad != N:
        x_flat = jnp.pad(x_flat, ((0, n_pad - N), (0, 0), (0, 0)))

    # (Cout, Cin, 3, 3) -> (Cout, kh, kw, cin_pad) -> (Cout, 9*cin_pad); tiny.
    w_khwc = jnp.transpose(weight, (0, 2, 3, 1))
    if Cin_pad != Cin:
        w_khwc = jnp.pad(w_khwc, ((0, 0), (0, 0), (0, 0), (0, Cin_pad - Cin)))
    w_mat = w_khwc.reshape(Cout, 9 * Cin_pad).astype(col_dtype)
    b_col = bias.reshape(Cout, 1)

    cost = pl.CostEstimate(
        flops=2 * n_pad * Cout * 9 * Cin * HW,
        transcendentals=0,
        bytes_accessed=int(
            n_pad * Cin * HW * in_dtype.itemsize
            + n_pad * Cout * HW * in_dtype.itemsize
            + w_mat.size * w_mat.dtype.itemsize
            + bias.size * jnp.dtype(bias.dtype).itemsize
        ),
    )

    out_flat = pl.pallas_call(
        functools.partial(
            _outconv_kernel, H=H, W=W, cin=Cin, cin_pad=Cin_pad, nb=nb
        ),
        out_shape=jax.ShapeDtypeStruct((n_pad, Cout, HW), in_dtype),
        grid_spec=pltpu.PrefetchScalarGridSpec(
            num_scalar_prefetch=0,
            grid=(grid_n,),
            in_specs=[
                pl.BlockSpec((nb, Cin, HW), lambda g: (g, 0, 0)),
                pl.BlockSpec((Cout, 9 * Cin_pad), lambda g: (0, 0)),
                pl.BlockSpec((Cout, 1), lambda g: (0, 0)),
            ],
            out_specs=pl.BlockSpec((nb, Cout, HW), lambda g: (g, 0, 0)),
            scratch_shapes=[pltpu.VMEM((nb, 9 * Cin_pad, HW), col_dtype)],
        ),
        compiler_params=pltpu.CompilerParams(
            dimension_semantics=("parallel",),
            vmem_limit_bytes=32 * 1024 * 1024,
        ),
        cost_estimate=cost,
    )(x_flat, w_mat, b_col)

    if n_pad != N:
        out_flat = out_flat[:N]
    return out_flat.reshape(N, Cout, H, W)


if __name__ == "__main__":
    key = jax.random.PRNGKey(0)
    k_x, k_w, k_b = jax.random.split(key, 3)

    N, Cin, Cout, H, W = 2, 4, 3, 16, 16

    x = jax.random.normal(k_x, (N, Cin, H, W), dtype=jnp.float32)
    # deterministic "kaiming-uniform-like" init (bound = 1/sqrt(fan_in))
    fan_in = Cin * 3 * 3
    bound = 1.0 / (fan_in ** 0.5)
    weight = jax.random.uniform(k_w, (Cout, Cin, 3, 3), jnp.float32, -bound, bound)
    bias = jax.random.uniform(k_b, (Cout,), jnp.float32, -bound, bound)

    out = outconv_forward(x, weight, bias)
    out = jax.block_until_ready(out)

    # reference check with XLA conv (NCHW, OIHW)
    ref = jax.lax.conv_general_dilated(
        x, weight, window_strides=(1, 1), padding=((1, 1), (1, 1)),
        dimension_numbers=("NCHW", "OIHW", "NCHW"),
    ) + bias.reshape(1, Cout, 1, 1)

    assert out.shape == (N, Cout, H, W)
    assert jnp.allclose(out, ref, atol=1e-4, rtol=1e-4)
    print("KERNEL_OK")
</pallas_src>

<mosaic_0001>
module attributes {stable_mosaic.version = 11 : i64} {
  func.func @_outconv_kernel(%arg0: i32, %arg1: memref<1x4x256xf32, #tpu.memory_space<vmem>>, %arg2: memref<3x72xf32, #tpu.memory_space<vmem>>, %arg3: memref<3x1xf32, #tpu.memory_space<vmem>>, %arg4: memref<1x3x256xf32, #tpu.memory_space<vmem>>, %arg5: memref<1x72x256xf32, #tpu.memory_space<vmem>>) attributes {dimension_semantics = [#tpu.dimension_semantics<parallel>], iteration_bounds = array<i64: 2>, scalar_prefetch = 0 : i64, scratch_operands = 1 : i64, tpu.core_type = #tpu.core_type<tc>, window_params = [{transform_indices = @transform_0, window_bounds = array<i64: 1, 4, 256>}, {pipeline_mode = #tpu.pipeline_mode<synchronous>, transform_indices = @transform_1, window_bounds = array<i64: 3, 72>}, {pipeline_mode = #tpu.pipeline_mode<synchronous>, transform_indices = @transform_2, window_bounds = array<i64: 3, 1>}, {transform_indices = @transform_3, window_bounds = array<i64: 1, 3, 256>}]} {
    %0 = tpu.iota {dimensions = array<i32: 1>} : vector<4x256xi32>
    %c15_i32 = arith.constant 15 : i32
    %1 = vector.broadcast %c15_i32 : i32 to vector<4x256xi32>
    %2 = arith.andi %0, %1 : vector<4x256xi32>
    %c16_i32 = arith.constant 16 : i32
    %3 = vector.broadcast %c16_i32 : i32 to vector<4x256xi32>
    %4 = arith.cmpi sge, %0, %3 : vector<4x256xi32>
    %c240_i32 = arith.constant 240 : i32
    %5 = vector.broadcast %c240_i32 : i32 to vector<4x256xi32>
    %6 = arith.cmpi slt, %0, %5 : vector<4x256xi32>
    %c1_i32 = arith.constant 1 : i32
    %7 = vector.broadcast %c1_i32 : i32 to vector<4x256xi32>
    %8 = arith.cmpi sge, %2, %7 : vector<4x256xi32>
    %c15_i32_0 = arith.constant 15 : i32
    %9 = vector.broadcast %c15_i32_0 : i32 to vector<4x256xi32>
    %10 = arith.cmpi slt, %2, %9 : vector<4x256xi32>
    %c0 = arith.constant 0 : index
    %c0_1 = arith.constant 0 : index
    %11 = vector.load %arg2[%c0, %c0_1] : memref<3x72xf32, #tpu.memory_space<vmem>>, vector<3x72xf32>
    %c0_2 = arith.constant 0 : index
    %c0_3 = arith.constant 0 : index
    %12 = vector.load %arg3[%c0_2, %c0_3] : memref<3x1xf32, #tpu.memory_space<vmem>>, vector<3x1xf32>
    %cst = arith.constant 0.000000e+00 : f32
    %13 = vector.broadcast %cst : f32 to vector<1x72x256xf32>
    %c0_4 = arith.constant 0 : index
    %c0_5 = arith.constant 0 : index
    %c0_6 = arith.constant 0 : index
    %14 = vector.load %arg5[%c0_4, %c0_5, %c0_6] : memref<1x72x256xf32, #tpu.memory_space<vmem>>, vector<1x72x256xf32>
    tpu.vector_store %arg5[%c0_4, %c0_5, %c0_6], %13 {strides = array<i32>} : memref<1x72x256xf32, #tpu.memory_space<vmem>>, vector<1x72x256xf32>,
    %c0_7 = arith.constant 0 : index
    %c0_8 = arith.constant 0 : index
    %c0_9 = arith.constant 0 : index
    %15 = vector.load %arg1[%c0_7, %c0_8, %c0_9] : memref<1x4x256xf32, #tpu.memory_space<vmem>>, vector<1x4x256xf32>
    %16 = vector.shape_cast %15 : vector<1x4x256xf32> to vector<4x256xf32>
    %c17_i32 = arith.constant 17 : i32
    %17 = tpu.dynamic_rotate %16 by %c17_i32 dim 1 : vector<4x256xf32>, i32 -> vector<4x256xf32>
    %18 = arith.andi %4, %8 : vector<4x256xi1>
    %c0_i32 = arith.constant 0 : i32
    %19 = arith.sitofp %c0_i32 : i32 to f32
    %20 = vector.broadcast %19 : f32 to vector<4x256xf32>
    %21 = arith.select %18, %17, %20 : vector<4x256xi1>, vector<4x256xf32>
    %c0_10 = arith.constant 0 : index
    %c0_11 = arith.constant 0 : index
    %c0_12 = arith.constant 0 : index
    %22 = vector.load %arg5[%c0_10, %c0_11, %c0_12] : memref<1x72x256xf32, #tpu.memory_space<vmem>>, vector<1x4x256xf32>
    %23 = vector.shape_cast %22 : vector<1x4x256xf32> to vector<4x256xf32>
    %24 = vector.shape_cast %21 : vector<4x256xf32> to vector<1x4x256xf32>
    tpu.vector_store %arg5[%c0_10, %c0_11, %c0_12], %24 {strides = array<i32>} : memref<1x72x256xf32, #tpu.memory_space<vmem>>, vector<1x4x256xf32>,
    %c16_i32_13 = arith.constant 16 : i32
    %25 = tpu.dynamic_rotate %16 by %c16_i32_13 dim 1 : vector<4x256xf32>, i32 -> vector<4x256xf32>
    %c0_i32_14 = arith.constant 0 : i32
    %26 = arith.sitofp %c0_i32_14 : i32 to f32
    %27 = vector.broadcast %26 : f32 to vector<4x256xf32>
    %28 = arith.select %4, %25, %27 : vector<4x256xi1>, vector<4x256xf32>
    %c0_15 = arith.constant 0 : index
    %c8 = arith.constant 8 : index
    %c0_16 = arith.constant 0 : index
    %29 = vector.load %arg5[%c0_15, %c8, %c0_16] : memref<1x72x256xf32, #tpu.memory_space<vmem>>, vector<1x4x256xf32>
    %30 = vector.shape_cast %29 : vector<1x4x256xf32> to vector<4x256xf32>
    %31 = vector.shape_cast %28 : vector<4x256xf32> to vector<1x4x256xf32>
    tpu.vector_store %arg5[%c0_15, %c8, %c0_16], %31 {strides = array<i32>} : memref<1x72x256xf32, #tpu.memory_space<vmem>>, vector<1x4x256xf32>,
    %c15_i32_17 = arith.constant 15 : i32
    %32 = tpu.dynamic_rotate %16 by %c15_i32_17 dim 1 : vector<4x256xf32>, i32 -> vector<4x256xf32>
    %33 = arith.andi %4, %10 : vector<4x256xi1>
    %c0_i32_18 = arith.constant 0 : i32
    %34 = arith.sitofp %c0_i32_18 : i32 to f32
    %35 = vector.broadcast %34 : f32 to vector<4x256xf32>
    %36 = arith.select %33, %32, %35 : vector<4x256xi1>, vector<4x256xf32>
    %c0_19 = arith.constant 0 : index
    %c16 = arith.constant 16 : index
    %c0_20 = arith.constant 0 : index
    %37 = vector.load %arg5[%c0_19, %c16, %c0_20] : memref<1x72x256xf32, #tpu.memory_space<vmem>>, vector<1x4x256xf32>
    %38 = vector.shape_cast %37 : vector<1x4x256xf32> to vector<4x256xf32>
    %39 = vector.shape_cast %36 : vector<4x256xf32> to vector<1x4x256xf32>
    tpu.vector_store %arg5[%c0_19, %c16, %c0_20], %39 {strides = array<i32>} : memref<1x72x256xf32, #tpu.memory_space<vmem>>, vector<1x4x256xf32>,
    %c1_i32_21 = arith.constant 1 : i32
    %40 = tpu.dynamic_rotate %16 by %c1_i32_21 dim 1 : vector<4x256xf32>, i32 -> vector<4x256xf32>
    %c0_i32_22 = arith.constant 0 : i32
    %41 = arith.sitofp %c0_i32_22 : i32 to f32
    %42 = vector.broadcast %41 : f32 to vector<4x256xf32>
    %43 = arith.select %8, %40, %42 : vector<4x256xi1>, vector<4x256xf32>
    %c0_23 = arith.constant 0 : index
    %c24 = arith.constant 24 : index
    %c0_24 = arith.constant 0 : index
    %44 = vector.load %arg5[%c0_23, %c24, %c0_24] : memref<1x72x256xf32, #tpu.memory_space<vmem>>, vector<1x4x256xf32>
    %45 = vector.shape_cast %44 : vector<1x4x256xf32> to vector<4x256xf32>
    %46 = vector.shape_cast %43 : vector<4x256xf32> to vector<1x4x256xf32>
    tpu.vector_store %arg5[%c0_23, %c24, %c0_24], %46 {strides = array<i32>} : memref<1x72x256xf32, #tpu.memory_space<vmem>>, vector<1x4x256xf32>,
    %c0_25 = arith.constant 0 : index
    %c32 = arith.constant 32 : index
    %c0_26 = arith.constant 0 : index
    %47 = vector.load %arg5[%c0_25, %c32, %c0_26] : memref<1x72x256xf32, #tpu.memory_space<vmem>>, vector<1x4x256xf32>
    %48 = vector.shape_cast %47 : vector<1x4x256xf32> to vector<4x256xf32>
    %49 = vector.shape_cast %16 : vector<4x256xf32> to vector<1x4x256xf32>
    tpu.vector_store %arg5[%c0_25, %c32, %c0_26], %49 {strides = array<i32>} : memref<1x72x256xf32, #tpu.memory_space<vmem>>, vector<1x4x256xf32>,
    %c255_i32 = arith.constant 255 : i32
    %50 = tpu.dynamic_rotate %16 by %c255_i32 dim 1 : vector<4x256xf32>, i32 -> vector<4x256xf32>
    %c0_i32_27 = arith.constant 0 : i32
    %51 = arith.sitofp %c0_i32_27 : i32 to f32
    %52 = vector.broadcast %51 : f32 to vector<4x256xf32>
    %53 = arith.select %10, %50, %52 : vector<4x256xi1>, vector<4x256xf32>
    %c0_28 = arith.constant 0 : index
    %c40 = arith.constant 40 : index
    %c0_29 = arith.constant 0 : index
    %54 = vector.load %arg5[%c0_28, %c40, %c0_29] : memref<1x72x256xf32, #tpu.memory_space<vmem>>, vector<1x4x256xf32>
    %55 = vector.shape_cast %54 : vector<1x4x256xf32> to vector<4x256xf32>
    %56 = vector.shape_cast %53 : vector<4x256xf32> to vector<1x4x256xf32>
    tpu.vector_store %arg5[%c0_28, %c40, %c0_29], %56 {strides = array<i32>} : memref<1x72x256xf32, #tpu.memory_space<vmem>>, vector<1x4x256xf32>,
    %c241_i32 = arith.constant 241 : i32
    %57 = tpu.dynamic_rotate %16 by %c241_i32 dim 1 : vector<4x256xf32>, i32 -> vector<4x256xf32>
    %58 = arith.andi %6, %8 : vector<4x256xi1>
    %c0_i32_30 = arith.constant 0 : i32
    %59 = arith.sitofp %c0_i32_30 : i32 to f32
    %60 = vector.broadcast %59 : f32 to vector<4x256xf32>
    %61 = arith.select %58, %57, %60 : vector<4x256xi1>, vector<4x256xf32>
    %c0_31 = arith.constant 0 : index
    %c48 = arith.constant 48 : index
    %c0_32 = arith.constant 0 : index
    %62 = vector.load %arg5[%c0_31, %c48, %c0_32] : memref<1x72x256xf32, #tpu.memory_space<vmem>>, vector<1x4x256xf32>
    %63 = vector.shape_cast %62 : vector<1x4x256xf32> to vector<4x256xf32>
    %64 = vector.shape_cast %61 : vector<4x256xf32> to vector<1x4x256xf32>
    tpu.vector_store %arg5[%c0_31, %c48, %c0_32], %64 {strides = array<i32>} : memref<1x72x256xf32, #tpu.memory_space<vmem>>, vector<1x4x256xf32>,
    %c240_i32_33 = arith.constant 240 : i32
    %65 = tpu.dynamic_rotate %16 by %c240_i32_33 dim 1 : vector<4x256xf32>, i32 -> vector<4x256xf32>
    %c0_i32_34 = arith.constant 0 : i32
    %66 = arith.sitofp %c0_i32_34 : i32 to f32
    %67 = vector.broadcast %66 : f32 to vector<4x256xf32>
    %68 = arith.select %6, %65, %67 : vector<4x256xi1>, vector<4x256xf32>
    %c0_35 = arith.constant 0 : index
    %c56 = arith.constant 56 : index
    %c0_36 = arith.constant 0 : index
    %69 = vector.load %arg5[%c0_35, %c56, %c0_36] : memref<1x72x256xf32, #tpu.memory_space<vmem>>, vector<1x4x256xf32>
    %70 = vector.shape_cast %69 : vector<1x4x256xf32> to vector<4x256xf32>
    %71 = vector.shape_cast %68 : vector<4x256xf32> to vector<1x4x256xf32>
    tpu.vector_store %arg5[%c0_35, %c56, %c0_36], %71 {strides = array<i32>} : memref<1x72x256xf32, #tpu.memory_space<vmem>>, vector<1x4x256xf32>,
    %c239_i32 = arith.constant 239 : i32
    %72 = tpu.dynamic_rotate %16 by %c239_i32 dim 1 : vector<4x256xf32>, i32 -> vector<4x256xf32>
    %73 = arith.andi %6, %10 : vector<4x256xi1>
    %c0_i32_37 = arith.constant 0 : i32
    %74 = arith.sitofp %c0_i32_37 : i32 to f32
    %75 = vector.broadcast %74 : f32 to vector<4x256xf32>
    %76 = arith.select %73, %72, %75 : vector<4x256xi1>, vector<4x256xf32>
    %c0_38 = arith.constant 0 : index
    %c64 = arith.constant 64 : index
    %c0_39 = arith.constant 0 : index
    %77 = vector.load %arg5[%c0_38, %c64, %c0_39] : memref<1x72x256xf32, #tpu.memory_space<vmem>>, vector<1x4x256xf32>
    %78 = vector.shape_cast %77 : vector<1x4x256xf32> to vector<4x256xf32>
    %79 = vector.shape_cast %76 : vector<4x256xf32> to vector<1x4x256xf32>
    tpu.vector_store %arg5[%c0_38, %c64, %c0_39], %79 {strides = array<i32>} : memref<1x72x256xf32, #tpu.memory_space<vmem>>, vector<1x4x256xf32>,
    %c0_40 = arith.constant 0 : index
    %c0_41 = arith.constant 0 : index
    %c0_42 = arith.constant 0 : index
    %80 = vector.load %arg5[%c0_40, %c0_41, %c0_42] : memref<1x72x256xf32, #tpu.memory_space<vmem>>, vector<1x72x256xf32>
    %81 = vector.shape_cast %80 : vector<1x72x256xf32> to vector<72x256xf32>
    %cst_43 = arith.constant dense<0.000000e+00> : vector<3x256xf32>
    %82 = tpu.matmul %11, %81, %cst_43 {dimension_numbers = #tpu.dot_dimension_numbers<[1], [0], [0], [1], [0, 0, 1, 1], [], []>} : vector<3x72xf32>, vector<72x256xf32>, vector<3x256xf32> -> vector<3x256xf32>
    %83 = vector.broadcast %12 : vector<3x1xf32> to vector<3x256xf32>
    %84 = arith.addf %82, %83 : vector<3x256xf32>
    %c0_44 = arith.constant 0 : index
    %c0_45 = arith.constant 0 : index
    %c0_46 = arith.constant 0 : index
    %85 = vector.load %arg4[%c0_44, %c0_45, %c0_46] : memref<1x3x256xf32, #tpu.memory_space<vmem>>, vector<1x3x256xf32>
    %86 = vector.shape_cast %85 : vector<1x3x256xf32> to vector<3x256xf32>
    %87 = vector.shape_cast %84 : vector<3x256xf32> to vector<1x3x256xf32>
    tpu.vector_store %arg4[%c0_44, %c0_45, %c0_46], %87 {strides = array<i32>} : memref<1x3x256xf32, #tpu.memory_space<vmem>>, vector<1x3x256xf32>,
    return
  }
  func.func @transform_0(%arg0: i32) -> (i32, i32, i32) {
    %c0_i32 = arith.constant 0 : i32
    %c0_i32_0 = arith.constant 0 : i32
    %c0_i32_1 = arith.constant 0 : i32
    return %arg0, %c0_i32, %c0_i32_0 : i32, i32, i32
  }
  func.func @transform_1(%arg0: i32) -> (i32, i32) {
    %c0_i32 = arith.constant 0 : i32
    %c0_i32_0 = arith.constant 0 : i32
    %c0_i32_1 = arith.constant 0 : i32
    return %c0_i32, %c0_i32_0 : i32, i32
  }
  func.func @transform_2(%arg0: i32) -> (i32, i32) {
    %c0_i32 = arith.constant 0 : i32
    %c0_i32_0 = arith.constant 0 : i32
    %c0_i32_1 = arith.constant 0 : i32
    return %c0_i32, %c0_i32_0 : i32, i32
  }
  func.func @transform_3(%arg0: i32) -> (i32, i32, i32) {
    %c0_i32 = arith.constant 0 : i32
    %c0_i32_0 = arith.constant 0 : i32
    %c0_i32_1 = arith.constant 0 : i32
    return %arg0, %c0_i32, %c0_i32_0 : i32, i32, i32
  }
}

</mosaic_0001>

<bundles_post_ra>
// kernel: tpu_custom_call.1
= control target key start
LH: loop header
LB: loop body
LE: loop exit
PB: predicated region body
PF: predicated region fallthrough
CT: control target
= control target key end

     0   :  { %8 = vsyncpa [#allocation4], 0  ;;  %s871_s0 = inlined_call_operand.hbm [shape: f32[2,4,256], index: 0, kind: input, shape index: {}]   ;;  %s872_s1 = inlined_call_operand.vmem [shape: f32[3,72], index: 1, kind: input, shape index: {}]   ;;  %s873_s2 = inlined_call_operand.vmem [shape: f32[3,1], index: 2, kind: input, shape index: {}]   ;;  %s874_s3 = inlined_call_operand.vmem [shape: f32[2,3,256], index: 3, kind: output, shape index: {}]  }
   0x1   :  { %10 = vsyncpa [#allocation4 + $0x1], 0  ;;  %s673_s12 = smov 0   ;;  %s675_s13 = smov 0  }
   0x2   :  { %s677_s14 = smov 0   ;;  %s679_s15 = smov 0  }
   0x3 LB: > { %s692_s16 = sadd.s32 4294967295, %s640_s15   ;;  %s695_s17 = sadd.s32 1, %s640_s15   ;;  %s640_s15 = sphi %s679_s15, %s894_s15   ;;  %s636_s14 = sphi %s677_s14, %s893_s14   ;;  %s632_s13 = sphi %s675_s13, %s892_s13   ;;  %s628_s12 = sphi %s673_s12, %s891_s12  }
   0x4   : > { %s20_s18 = ssub.s32 %s640_s15, %s695_s17  ;;  %s23_s19 = sadd.s32 1, %s636_s14 }
   0x5   : > { %p21_p0 = scmp.eq.s32.totalorder %s20_s18, 0  ;;  %p30_p1 = scmp.ne.s32.totalorder %s636_s14, %s632_s13 }
   0x6   : > { %p31_p2 = scmp.eq.s32.totalorder %s640_s15, 0  ;;  %p36_p3 = scmp.ne.s32.totalorder %s632_s13, %s628_s12 }
   0x7   : > { %s705_s20 = scalar_select %p21_p0, %s636_s14, %s23_s19  }
   0x8   : > { %p32_p4 = por %p31_p2, %p30_p1  ;;  %p37_p5 = scmp.eq.s32.totalorder %s692_s16, 0 }
   0x9   : > { %p531_p6 = scmp.lt.s32.totalorder %s640_s15, 2  ;;  %s134_s22 = sand.u32 1, %s636_s14  }
   0xa   : > { %p709_p7 = por %p37_p5, %p36_p3  ;;  %s497_s23 = sshll.u32 %s134_s22, 3 }
   0xb   : > { %s507_s24 = sshll.u32 %s640_s15, 7  ;;  %s138_s28 = scalar_lea.vmem [#allocation3], %s497_s23 }
   0xc   : > { %s718_s27 = scalar_lea.hbm %s871_s0, %s507_s24  ;;  %s146_s29 = sshll.u32 %s138_s28, 4  ;;  %s720_s29 = int_to_ptr.vmem [resolvable:$true] %s146_s29 }
   0xd   : > { %p722_p8 = pnand %p531_p6, %p32_p4  ;;  %s135_s4 = scalar_lea.sflag [#allocation4], %s134_s22 }
   0xe   : > { %s576_s5 = scalar_lea.hbm %s718_s27, 128  ;;  %s581_s8 = scalar_lea.hbm %s871_s0, 256 }
   0xf   : > { %p577_p11 = scmp.ne.s32.totalorder %s718_s27, %s576_s5  ;;  %p578_p12 = pneg %p722_p8 }
  0x10   : > { %p582_p1 = scmp.lt.u32.totalorder %s718_s27, %s871_s0  ;;  %p583_p2 = scmp.lt.u32.totalorder %s581_s8, %s576_s5 }
  0x11   : > { %p579_p13 = pnand %p578_p12, %p577_p11  ;;  %p585_p4 = scmp.lt.u32.totalorder %s576_s5, %s718_s27 }
  0x12   : > { %p584_p3 = por %p583_p2, %p582_p1 }
  0x13   : > { %p580_p0 = pneg %p579_p13 }
  0x14   : > { %p586_p5 = por %p585_p4, %p584_p3 }
  0x16   : > { %p587_p6 = pnand %p586_p5, %p580_p0 }
  0x18   : > { %590 = shalt.err (!%p587_p6)
}
  0x19   : > { %s591_s11 = scalar_lea.vmem %s720_s29, 128  ;;  %s642_s12 = smov [#allocation3]  }
  0x1a   : > { %p592_p11 = scmp.ne.s32.totalorder %s720_s29, %s591_s11  ;;  %s596_s18 = sshll.u32 %s642_s12, 4  ;;  %s597_s18 = int_to_ptr.vmem [resolvable:$false] %s596_s18 }
  0x1b   : > { %s598_s19 = scalar_lea.vmem %s597_s18, 256  ;;  %p599_p10 = scmp.lt.s32.totalorder %s720_s29, %s597_s18 }
  0x1c   : > { %p594_p13 = pnand %p592_p11, %p578_p12  ;;  %p600_p1 = scmp.lt.s32.totalorder %s598_s19, %s591_s11 }
  0x1e   : > { %p595_p9 = pneg %p594_p13  ;;  %p601_p2 = por %p600_p1, %p599_p10 }
  0x20   : > { %p602_p3 = pnand %p601_p2, %p595_p9 }
  0x22   : > { %605 = shalt.err (!%p602_p3)
}
  0x23   : > { %530 = dma.hbm_to_vmem [thread:$0]  (!%p722_p8), %s718_s27, 128, %s720_s29, %s135_s4  }
  0x24   : > { %p877_p0 = scmp.lt.s32.totalorder %s640_s15, 3  ;;  %p878_p4 = scmp.ge.s32.totalorder %s640_s15, 1 }
  0x26   : > { %p152_p12 = pnand %p878_p4, %p877_p0 }
  0x27   : > { %s157_s22 = sand.u32 (!%p152_p12), 1, %s632_s13  }
  0x28   : > { %155 = sbr.rel (%p152_p12) target bundleno = 425 (0x1a9), region = 32  ;;  %s501_s23 = sshll.u32 (!%p152_p12), %s157_s22, 3 }
  0x29   : > { %s158_s24 = scalar_lea.sflag (!%p152_p12), [#allocation4], %s157_s22  ;;  %s161_s25 = scalar_lea.vmem (!%p152_p12), [#allocation3], %s501_s23 }
  0x2f   : > { %623 = dma.done.wait (%p709_p7), %s158_s24, 128  }
  0x30   : > { %625 = vsyncadd (%p709_p7), %s158_s24, 4294967168  ;;  %v643_v0 = vmov 0.0   ;;  %v222_v1 = vld [vmem:[%s161_s25] sm:$0xff]  ;;  %s644_s15 = smov 16   ;;  %s645_s21 = smov 17   ;;  %v652_v4 = vmov 0   ;;  %v189_v5 = vlaneseq }
  0x31   : > { %206 = vst [vmem:[#allocation2 + $0x10] sm:$0xff] %v643_v0  ;;  %207 = vst [vmem:[#allocation2 + $0x18] sm:$0xff] %v643_v0  ;;  %415 = vmatprep.mubr.f32.mxu0 %v643_v0  ;;  %239 = vrot.lane.b32.xlu1 %v222_v1, %s644_s15  ;;  %v224_v2 = vcombine.high %v222_v1, %v222_v1  ;;  %s646_s26 = smov 15   ;;  %s647_s27 = smov 1   ;;  %v203_v3 = vld [vmem:[%s873_s2] sm:$0x7] }
  0x32   : > { %204 = vst [vmem:[#allocation2] sm:$0xff] %v643_v0  ;;  %205 = vst [vmem:[#allocation2 + $0x8] sm:$0xff] %v643_v0  ;;  %226 = vrot.lane.b32.xlu0 %v222_v1, %s645_s21  ;;  %s648_s28 = smov 127   ;;  %s649_s29 = smov 113   ;;  %v765_v6 = vand.u32 127, %v189_v5 }
  0x33   : > { %208 = vst [vmem:[#allocation2 + $0x20] sm:$0xff] %v643_v0  ;;  %209 = vst [vmem:[#allocation2 + $0x28] sm:$0xff] %v643_v0  ;;  %s650_s30 = smov 112   ;;  %s651_s4 = smov 111   ;;  %574 = vset.pattern.permute.xlu0 %v652_v4  ;;  %v202_v12 = vld [vmem:[%s872_s1] sm:$0x7] }
  0x34   : > { %210 = vst [vmem:[#allocation2 + $0x30] sm:$0xff] %v643_v0  ;;  %211 = vst [vmem:[#allocation2 + $0x38] sm:$0xff] %v643_v0  ;;  %v768_v7 = vadd.s32 128, %v765_v6  ;;  %v192_v8 = vand.u32 15, %v765_v6  ;;  %vm243_vm0 = vcmp.lt.s32.totalorder %v765_v6, 16  ;;  %vm194_vm1 = vcmp.ge.s32.totalorder %v765_v6, 16 }
  0x35   : > { %212 = vst [vmem:[#allocation2 + $0x40] sm:$0xff] %v643_v0  ;;  %213 = vst [vmem:[#allocation2 + $0x48] sm:$0xff] %v643_v0  ;;  %241 = vrot.lane.b32.xlu1 %v224_v2, %s644_s15  ;;  %vm254_vm4 = vcmp.lt.s32.totalorder %v765_v6, 15  ;;  %vm230_vm6 = vcmp.lt.s32.totalorder %v765_v6, 17  ;;  %vm267_vm10 = vcmp.lt.s32.totalorder %v765_v6, 1  ;;  %vm280_vm11 = vcmp.lt.s32.totalorder %v765_v6, 127 }
  0x36   : > { %214 = vst [vmem:[#allocation2 + $0x50] sm:$0xff] %v643_v0  ;;  %215 = vst [vmem:[#allocation2 + $0x58] sm:$0xff] %v643_v0  ;;  %250 = vrot.lane.b32.xlu0 %v222_v1, %s646_s26  ;;  %v193_v11 = vand.u32 15, %v768_v7  ;;  %vm774_vm2 = vcmp.lt.s32.totalorder %v192_v8, 15  ;;  %vm778_vm3 = vcmp.ge.s32.totalorder %v192_v8, 1  ;;  %vm197_vm12 = vcmp.lt.s32.totalorder %v768_v7, 240 }
  0x37   : > { %216 = vst [vmem:[#allocation2 + $0x60] sm:$0xff] %v643_v0  ;;  %217 = vst [vmem:[#allocation2 + $0x68] sm:$0xff] %v643_v0  ;;  %vm291_vm13 = vcmp.lt.s32.totalorder %v765_v6, 113  ;;  %vm304_vm15 = vcmp.lt.s32.totalorder %v765_v6, 112  ;;  %p184_p7 = scmp.lt.s32.totalorder %s692_s16, 1 }
  0x38   : > { %218 = vst [vmem:[#allocation2 + $0x70] sm:$0xff] %v643_v0  ;;  %219 = vst [vmem:[#allocation2 + $0x78] sm:$0xff] %v643_v0  ;;  %vm794_vm7 = vcmp.lt.s32.totalorder %v193_v11, 15  ;;  %vm798_vm8 = vcmp.ge.s32.totalorder %v193_v11, 1 }
  0x39   : > { %220 = vst [vmem:[#allocation2 + $0x80] sm:$0xff] %v643_v0  ;;  %221 = vst [vmem:[#allocation2 + $0x88] sm:$0xff] %v643_v0  ;;  %252 = vrot.lane.b32.xlu1 %v224_v2, %s646_s26  ;;  %s896_s16 = smov (!%p184_p7, %s692_s16), 1 }
  0x3a   : > { %274 = vst [vmem:[#allocation2 + $0x40] sm:$0xf] %v222_v1  ;;  %275 = vst [vmem:[#allocation2 + $0x48] sm:$0xf] %v224_v2  ;;  %228 = vrot.lane.b32.xlu0 %v224_v2, %s645_s21  ;;  %s508_s9 = sshll.u32 %s896_s16, 3 }
  0x3b   : > { %vm789_vm5 = vmand %vm194_vm1, %vm774_vm2  ;;  %s188_s12 = scalar_lea.vmem %s874_s3, %s508_s9 }
  0x3c   : > { %vm233_vm9 = vmand %vm194_vm1, %vm778_vm3 }
  0x3d   : > { %265 = vrot.lane.b32.xlu1 %v224_v2, %s647_s27  ;;  %vm832_vm14 = vmand %vm197_vm12, %vm798_vm8 }
  0x3e   : > { %263 = vrot.lane.b32.xlu0 %v222_v1, %s647_s27 }
  0x41   : > { %278 = vrot.lane.b32.xlu1 %v224_v2, %s648_s28 }
  0x42   : > { %276 = vrot.lane.b32.xlu0 %v222_v1, %s648_s28 }
  0x45   : > { %289 = vrot.lane.b32.xlu1 %v224_v2, %s649_s29 }
  0x46   : > { %287 = vrot.lane.b32.xlu0 %v222_v1, %s649_s29 }
  0x49   : > { %302 = vrot.lane.b32.xlu1 %v224_v2, %s650_s30 }
  0x4a   : > { %300 = vrot.lane.b32.xlu0 %v222_v1, %s650_s30 }
  0x4d   : > { %313 = vrot.lane.b32.xlu1 %v224_v2, %s651_s4  ;;  %v332_v2 = vld [vmem:[#allocation2 + $0x40] sm:$0xff] }
  0x4e   : > { %311 = vrot.lane.b32.xlu0 %v222_v1, %s651_s4  ;;  %v333_v1 = vld [vmem:[#allocation2 + $0x48] sm:$0xff] }
  0x52   : > { %344 = vperm.xlu0 %574, %v203_v3  }
  0xa3   : > { %v240_v9 = vpop.permute.xlu1 %239 }
  0xa4   : > { %v227_v10 = vpop.permute.xlu0 %226 }
  0xa7   : > { %v242_v14 = vpop.permute.xlu1 %241 }
  0xa8   : > { %v251_v13 = vpop.permute.xlu0 %250  ;;  %v244_v16 = vsel %vm243_vm0, %v240_v9, %v242_v14  ;;  %v245_v17 = vsel %vm243_vm0, %v242_v14, %v240_v9  ;;  %vm315_vm0 = vcmp.lt.s32.totalorder %v765_v6, 111 }
  0xa9   : > { %v246_v18 = vsel %vm194_vm1, %v245_v17, 0.0  ;;  %249 = vst [vmem:[#allocation2 + $0x18] sm:$0xf] %v244_v16  ;;  %vm319_vm1 = vmand %vm197_vm12, %vm794_vm7 }
  0xaa   : > { %248 = vst [vmem:[#allocation2 + $0x10] sm:$0xf] %v246_v18 }
  0xab   : > { %v253_v22 = vpop.permute.xlu1 %252 }
  0xac   : > { %v229_v23 = vpop.permute.xlu0 %228  ;;  %v255_v24 = vsel %vm254_vm4, %v251_v13, %v253_v22  ;;  %v256_v25 = vsel %vm254_vm4, %v253_v22, %v251_v13 }
  0xad   : > { %v231_v26 = vsel %vm230_vm6, %v227_v10, %v229_v23  ;;  %v232_v27 = vsel %vm230_vm6, %v229_v23, %v227_v10  ;;  %v259_v28 = vsel %vm789_vm5, %v256_v25, 0.0  ;;  %v260_v29 = vsel %vm794_vm7, %v255_v24, 0.0 }
  0xae   : > { %v235_v30 = vsel %vm233_vm9, %v232_v27, 0.0  ;;  %v236_v31 = vsel %vm798_vm8, %v231_v26, 0.0  ;;  %261 = vst [vmem:[#allocation2 + $0x20] sm:$0xf] %v259_v28  ;;  %262 = vst [vmem:[#allocation2 + $0x28] sm:$0xf] %v260_v29 }
  0xaf   : > { %237 = vst [vmem:[#allocation2] sm:$0xf] %v235_v30  ;;  %238 = vst [vmem:[#allocation2 + $0x8] sm:$0xf] %v236_v31  ;;  %v266_v32 = vpop.permute.xlu1 %265 }
  0xb0   : > { %v264_v33 = vpop.permute.xlu0 %263  ;;  %v327_v42 = vld [vmem:[#allocation2 + $0x18] sm:$0xff] }
  0xb1   : > { %v268_v34 = vsel %vm267_vm10, %v264_v33, %v266_v32  ;;  %v269_v35 = vsel %vm267_vm10, %v266_v32, %v264_v33  ;;  %v326_v47 = vld [vmem:[#allocation2 + $0x10] sm:$0xff] }
  0xb2   : > { %v270_v36 = vsel %vm778_vm3, %v269_v35, 0.0  ;;  %v271_v37 = vsel %vm798_vm8, %v268_v34, 0.0 }
  0xb3   : > { %272 = vst [vmem:[#allocation2 + $0x30] sm:$0xf] %v270_v36  ;;  %273 = vst [vmem:[#allocation2 + $0x38] sm:$0xf] %v271_v37  ;;  %v279_v38 = vpop.permute.xlu1 %278 }
  0xb4   : > { %v277_v39 = vpop.permute.xlu0 %276 }
  0xb5   : > { %v281_v40 = vsel %vm280_vm11, %v277_v39, %v279_v38  ;;  %v282_v41 = vsel %vm280_vm11, %v279_v38, %v277_v39  ;;  %v329_v55 = vld [vmem:[#allocation2 + $0x28] sm:$0xff]  ;;  %v328_v59 = vld [vmem:[#allocation2 + $0x20] sm:$0xff] }
  0xb6   : > { %v283_v43 = vsel %vm774_vm2, %v281_v40, 0.0  ;;  %v284_v44 = vsel %vm794_vm7, %v282_v41, 0.0  ;;  %v325_v45 = vld [vmem:[#allocation2 + $0x8] sm:$0xff]  ;;  %v324_v46 = vld [vmem:[#allocation2] sm:$0xff] }
  0xb7   : > { %285 = vst [vmem:[#allocation2 + $0x50] sm:$0xf] %v283_v43  ;;  %286 = vst [vmem:[#allocation2 + $0x58] sm:$0xf] %v284_v44  ;;  %v509_v49 = vpack.c.bf16 %v327_v42, %v325_v45  ;;  %v511_v50 = vpack.c.bf16 %v326_v47, %v324_v46  ;;  %v290_v51 = vpop.permute.xlu1 %289 }
  0xb8   : > { %v288_v52 = vpop.permute.xlu0 %287 }
  0xb9   : > { %v292_v53 = vsel %vm291_vm13, %v288_v52, %v290_v51  ;;  %v293_v54 = vsel %vm291_vm13, %v290_v51, %v288_v52  ;;  %510 = vmatprep.subr.bf16.mxu0 %v509_v49 }
  0xba   : > { %v296_v56 = vsel %vm778_vm3, %v292_v53, 0.0  ;;  %v297_v57 = vsel %vm832_vm14, %v293_v54, 0.0  ;;  %512 = vmatpush1.bf16.msra.mxu0 %v511_v50  ;;  %v331_v58 = vld [vmem:[#allocation2 + $0x38] sm:$0xff]  ;;  %v330_v60 = vld [vmem:[#allocation2 + $0x30] sm:$0xff] }
  0xbb   : > { %298 = vst [vmem:[#allocation2 + $0x60] sm:$0xf] %v296_v56  ;;  %299 = vst [vmem:[#allocation2 + $0x68] sm:$0xf] %v297_v57  ;;  %v513_v61 = vpack.c.bf16 %v331_v58, %v329_v55  ;;  %v515_v62 = vpack.c.bf16 %v330_v60, %v328_v59  ;;  %v303_v63 = vpop.permute.xlu1 %302 }
  0xbc   : > { %v301_v0 = vpop.permute.xlu0 %300 }
  0xbd   : > { %v305_v3 = vsel %vm304_vm15, %v301_v0, %v303_v63  ;;  %v306_v4 = vsel %vm304_vm15, %v303_v63, %v301_v0  ;;  %514 = vmatprep.subr.bf16.mxu0 %v513_v61 }
  0xbe   : > { %v308_v5 = vsel %vm197_vm12, %v306_v4, 0.0  ;;  %309 = vst [vmem:[#allocation2 + $0x70] sm:$0xf] %v305_v3  ;;  %516 = vmatpush1.bf16.msra.mxu0 %v515_v62  ;;  %v335_v8 = vld [vmem:[#allocation2 + $0x58] sm:$0xff]  ;;  %v334_v9 = vld [vmem:[#allocation2 + $0x50] sm:$0xff] }
  0xbf   : > { %310 = vst [vmem:[#allocation2 + $0x78] sm:$0xf] %v308_v5  ;;  %v517_v10 = vpack.c.bf16 %v335_v8, %v333_v1  ;;  %v519_v11 = vpack.c.bf16 %v334_v9, %v332_v2  ;;  %v314_v13 = vpop.permute.xlu1 %313 }
  0xc0   : > { %v312_v14 = vpop.permute.xlu0 %311 }
  0xc1   : > { %518 = vmatprep.subr.bf16.mxu0 %v517_v10  ;;  %v316_v15 = vsel %vm315_vm0, %v312_v14, %v314_v13  ;;  %v317_v16 = vsel %vm315_vm0, %v314_v13, %v312_v14 }
  0xc2   : > { %v320_v17 = vsel %vm774_vm2, %v316_v15, 0.0  ;;  %v321_v18 = vsel %vm319_vm1, %v317_v16, 0.0  ;;  %520 = vmatpush1.bf16.msra.mxu0 %v519_v11  ;;  %v337_v19 = vld [vmem:[#allocation2 + $0x68] sm:$0xff]  ;;  %v336_v21 = vld [vmem:[#allocation2 + $0x60] sm:$0xff]  ;;  %vm347_vm2 = vcmask 588800  }
  0xc3   : > { %322 = vst [vmem:[#allocation2 + $0x80] sm:$0xf] %v320_v17  ;;  %323 = vst [vmem:[#allocation2 + $0x88] sm:$0xf] %v321_v18 }
  0xc5   : > { %v338_v6 = vld [vmem:[#allocation2 + $0x70] sm:$0xff] }
  0xc6   : > { %v339_v20 = vld [vmem:[#allocation2 + $0x78] sm:$0xff]  ;;  %v523_v22 = vpack.c.bf16 %v338_v6, %v336_v21 }
  0xc7   : > { %v521_v7 = vpack.c.bf16 %v339_v20, %v337_v19 }
  0xc9   : > { %522 = vmatprep.subr.bf16.mxu0 %v521_v7 }
  0xca   : > { %524 = vmatpush1.bf16.msra.mxu0 %v523_v22  ;;  %v341_v23 = vld [vmem:[#allocation2 + $0x88] sm:$0xff]  ;;  %v340_v24 = vld [vmem:[#allocation2 + $0x80] sm:$0xff] }
  0xcb   : > { %367 = vmatprep.subr.mxu0 %v341_v23 }
  0xce   : > { %368 = vmatpush1.msra.mxu0 %v340_v24 }
  0xcf   : > { %504 = vmatmul.mubr.msk.f32.vlgmr.msra.gmra.mrb[0].mxu0 %vm347_vm2, %v202_v12 }
  0xd1   : > { %v345_v25 = vpop.permute.xlu0 %344 }
 0x1a2   : > { %v417_v26 = vpop.f32.mrb[0].mxu0 }
 0x1a3   : > { %v418_v27 = vadd.f32 %v417_v26, %v345_v25  ;;  %v419_v28 = vpop.f32.mrb[1].mxu0 }
 0x1a4   : > { %v420_v29 = vadd.f32 %v419_v28, %v345_v25 }
 0x1a6   : > { %v424_v30 = vcombine.low %v418_v27, %v420_v29 }
 0x1a8   : > { %426 = vst [vmem:[%s188_s12] sm:$0x77] %v424_v30 }
 0x1a9 PF: > { %p13_p8 = scmp.ge.s32.totalorder %s695_s17, 4   ;;  %s891_s12 = smov %s632_s13 }
 0x1aa   : > { %s892_s13 = smov %s636_s14  ;;  %s893_s14 = smov %s705_s20 }
 0x1ab   : > { %s894_s15 = smov %s695_s17  ;;  %15 = sbr.rel (!%p13_p8) target bundleno = 3 (0x3), region = 72 }
 0x1b2   :  { %448 = vsyncpa [#allocation4], 1 }
 0x1b3   :  { %450 = vsyncpa [#allocation4 + $0x1], 1 }

</bundles_post_ra>
